<compile_context>
chip_gen: v5e
topology: v5e:2x2
jax: 0.10.0
libtpu: 0.0.40
codegen_flags: <defaults>
</compile_context>

<pallas_src>
import functools

import jax
import jax.numpy as jnp
from jax.experimental import pallas as pl
from jax.experimental.pallas import tpu as pltpu

_LANE = 128
_SUBLANE = 8


def _ru(x, m):
    return -(-x // m) * m


def _vmem_capacity_bytes():
    try:
        return int(pltpu.get_tpu_info().vmem_capacity_bytes)
    except Exception:  # pragma: no cover - conservative fallback
        return 128 * 2 ** 20


def _pick_row_tile(n_rows, bytes_per_row, target_bytes):
    """Largest row tile (multiple of 8, or the full extent) whose per-row VMEM
    cost stays under target_bytes.  Prefers a tile that divides n_rows (no
    masked tail) when that is within 2x of the budget; never silently falls
    back to the full extent when it does not fit (review fix)."""
    budget_rows = max(1, target_bytes // max(bytes_per_row, 1))
    if budget_rows >= n_rows:
        return n_rows                       # full extent: always a legal block dim
    budget_rows = max(_SUBLANE, (budget_rows // _SUBLANE) * _SUBLANE)
    best_div = 0
    for t in range(_SUBLANE, min(budget_rows, n_rows) + 1, _SUBLANE):
        if n_rows % t == 0:
            best_div = t
    if best_div * 2 >= budget_rows:
        return best_div                     # divides evenly, close to the budget
    return budget_rows                      # budget-sized tile; tail rows masked


# --------------- Phase 1a: lane-dense reduce + project (F < 128) -------------


def _pool_project_flat_kernel(m_ref, w_ref, rowp_ref, colp_ref, *,
                              rows_total, row_tile, needs_mask):
    # m_ref:    [rt1, C*F]  lane-dense input tile (streamed, double-buffered)
    # w_ref:    [C*F, F]    stacked W_row / C  (row-mean folded into the matmul)
    # rowp_ref: [rt1, F]    per-tile output: row_mean @ W_row
    # colp_ref: [1, 1, C*F] per-tile output: partial column sums (lane-dense)
    m = m_ref[...]
    if needs_mask:  # trace-time flag: only emitted when R % rt1 != 0
        valid = rows_total - pl.program_id(0) * row_tile
        rows = jax.lax.broadcasted_iota(jnp.int32, m.shape, 0)
        m = jnp.where(rows < valid, m, jnp.zeros_like(m))
    rowp_ref[...] = jnp.dot(m, w_ref[...], preferred_element_type=jnp.float32)
    colp_ref[0] = jnp.sum(m, axis=0, keepdims=True, dtype=jnp.float32)


# --------------- Phase 1b: 3-D reduce + project (F >= 128 or huge C*F) -------


def _pool_project_3d_kernel(m_ref, w_ref, rowp_ref, colp_ref, *,
                            rows_total, row_tile, needs_mask, inv_cols):
    # m_ref:    [rt1, C, F]   input tile
    # w_ref:    [F, F]        W_row
    # rowp_ref: [rt1, F]      row_mean @ W_row
    # colp_ref: [1, C, F]     partial column sums
    m = m_ref[...]
    if needs_mask:
        valid = rows_total - pl.program_id(0) * row_tile
        rows = jax.lax.broadcasted_iota(jnp.int32, m.shape, 0)
        m = jnp.where(rows < valid, m, jnp.zeros_like(m))
    row_sum = jnp.sum(m, axis=1, dtype=jnp.float32)                 # [rt1, F]
    rowp_ref[...] = jnp.dot(row_sum, w_ref[...],
                            preferred_element_type=jnp.float32) * inv_cols
    colp_ref[0] = jnp.sum(m, axis=0, dtype=jnp.float32)             # [C, F]


# --------------- Phase 2: lane-dense streaming broadcast + relu --------------


def _broadcast_relu_kernel(row_ref, col_ref, o_ref):
    # row_ref: [rt2, L]   row projection, pre-tiled to a 128-lane period when cheap
    # col_ref: [1, L2]    (col_mean @ W_col + bias) chunk, lane-dense
    # o_ref:   [rt2, L2]  lane-dense output slab (unmasked stores when L2 % 128 == 0)
    row = row_ref[...]
    reps = o_ref.shape[-1] // row.shape[-1]
    # `row` is 128-lane periodic, so the tile is aligned vreg replication.
    slab = jnp.tile(row, (1, reps)) + col_ref[...]
    o_ref[...] = jnp.maximum(slab, 0.0).astype(o_ref.dtype)


# ------------------------------- wrapper -------------------------------------


def rowcol_pooling(matrix, weight_t, bias, *, row_tile=None, out_dtype=None):
    """matrix: [R, C, F]; weight_t: [2F, F] (= torch Linear weight.T); bias: [F].

    out_dtype: optional (e.g. jnp.bfloat16) to halve write-side HBM traffic;
    default keeps the module's f32 semantics exactly.
    """
    R, C, F = matrix.shape
    assert weight_t.shape == (2 * F, F)
    assert bias.shape == (F,)
    out_dtype = matrix.dtype if out_dtype is None else jnp.dtype(out_dtype)
    in_isz = jnp.dtype(matrix.dtype).itemsize
    out_isz = jnp.dtype(out_dtype).itemsize
    CF = C * F

    if row_tile is not None:
        assert row_tile == R or (row_tile % _SUBLANE == 0 and row_tile <= R)

    # ---- generation-aware VMEM budget (48 MiB on v7x, 96 MiB on v5e/v6e) ----
    vmem_cap = _vmem_capacity_bytes()
    gen_limit = max((vmem_cap * 3) // 4, 32 * 2 ** 20)
    # Total streamed bytes per grid row; yields ~8-16 MiB per buffered tile.
    tile_target = min(gen_limit // 2, 32 * 2 ** 20)

    w_row = weight_t[:F, :]
    w_col = weight_t[F:, :]

    # =============================== Phase 1 =================================
    use_flat = (F < _LANE) and (CF * F * 4 <= gen_limit // 8)

    if use_flat:
        m_in = matrix.reshape(R, CF)                    # contiguous view, free
        # Fold the row-mean into the projection: W_stack[c*F+k, :] = W_row[k, :] / C
        w_in = (jnp.tile(w_row, (C, 1)) * (1.0 / C)).astype(matrix.dtype)
        in_row_bytes = _ru(CF, _LANE) * in_isz
    else:
        m_in = matrix
        w_in = w_row.astype(jnp.float32)
        in_row_bytes = _ru(C, _SUBLANE) * _ru(F, _LANE) * in_isz

    p1_row_cost = 2 * in_row_bytes + 2 * _ru(F, _LANE) * 4   # dbl-buffered in + row_proj
    rt1 = row_tile if row_tile is not None else _pick_row_tile(R, p1_row_cost, tile_target)
    nsteps1 = pl.cdiv(R, rt1)
    needs_mask = (R % rt1) != 0

    rt1_pad = _ru(rt1, _SUBLANE)
    if use_flat:
        w_blk = _ru(CF, _SUBLANE) * _ru(F, _LANE) * 4
        colp_blk = _SUBLANE * _ru(CF, _LANE) * 4
    else:
        w_blk = _ru(F, _SUBLANE) * _ru(F, _LANE) * 4
        colp_blk = _ru(C, _SUBLANE) * _ru(F, _LANE) * 4
    vmem1 = 2 * (rt1_pad * in_row_bytes + w_blk
                 + rt1_pad * _ru(F, _LANE) * 4 + colp_blk) + 4 * 2 ** 20
    vmem1 = int(min(max(vmem1, 16 * 2 ** 20), gen_limit))

    if use_flat:
        kernel1 = functools.partial(_pool_project_flat_kernel,
                                    rows_total=R, row_tile=rt1, needs_mask=needs_mask)
        in_specs1 = [pl.BlockSpec((rt1, CF), lambda i: (i, 0)),
                     pl.BlockSpec((CF, F), lambda i: (0, 0))]
        colp_shape = jax.ShapeDtypeStruct((nsteps1, 1, CF), jnp.float32)
        colp_spec = pl.BlockSpec((1, 1, CF), lambda i: (i, 0, 0))
    else:
        kernel1 = functools.partial(_pool_project_3d_kernel,
                                    rows_total=R, row_tile=rt1, needs_mask=needs_mask,
                                    inv_cols=1.0 / C)
        in_specs1 = [pl.BlockSpec((rt1, C, F), lambda i: (i, 0, 0)),
                     pl.BlockSpec((F, F), lambda i: (0, 0))]
        colp_shape = jax.ShapeDtypeStruct((nsteps1, C, F), jnp.float32)
        colp_spec = pl.BlockSpec((1, C, F), lambda i: (i, 0, 0))

    row_proj, col_partials = pl.pallas_call(
        kernel1,
        grid_spec=pltpu.PrefetchScalarGridSpec(
            num_scalar_prefetch=0,
            grid=(nsteps1,),
            in_specs=in_specs1,
            out_specs=[pl.BlockSpec((rt1, F), lambda i: (i, 0)), colp_spec],
        ),
        out_shape=(jax.ShapeDtypeStruct((R, F), jnp.float32), colp_shape),
        compiler_params=pltpu.CompilerParams(
            dimension_semantics=("parallel",),      # no carried state -> v7x megacore
            vmem_limit_bytes=vmem1,
        ),
    )(m_in, w_in)

    # Tiny epilogue (C*F + C*F*F flops) finished in XLA, per review: keeps the
    # streaming grid fully parallel instead of serializing on a pl.when finalize.
    col_sum = jnp.sum(col_partials, axis=0, dtype=jnp.float32).reshape(C, F)
    col_part = (col_sum * (1.0 / R)) @ w_col.astype(jnp.float32) + bias.astype(jnp.float32)
    colflat = col_part.reshape(1, CF)

    # =============================== Phase 2 =================================
    # Pre-tile the row operand to a 128-lane period so the in-kernel lane tile
    # is pure vreg replication (no lane permutes).
    if F % _LANE == 0:
        row_src, L = row_proj, F
    elif (_LANE % F == 0) and (CF % _LANE == 0):
        row_src, L = jnp.tile(row_proj, (1, _LANE // F)), _LANE
    else:
        row_src, L = row_proj, F            # odd F: in-kernel tile of sub-128-lane row

    def _p2_row_cost(lane_w):
        return (2 * _ru(lane_w, _LANE) * out_isz     # double-buffered output slab
                + 3 * _ru(lane_w, _LANE) * 4         # f32 elementwise temporaries
                + 2 * _ru(L, _LANE) * 4)             # double-buffered row operand

    # Lane chunking (2-D grid) when even an 8-row slab of the full C*F width
    # would blow the budget (review fix for the old full-extent fallback).
    if (_SUBLANE * _p2_row_cost(CF) <= tile_target) or (CF % _LANE != 0) or (L % _LANE != 0):
        L2 = CF
    else:
        L2 = L
        cand = L
        while cand <= CF:
            if CF % cand == 0 and _SUBLANE * _p2_row_cost(cand) <= tile_target:
                L2 = cand
            cand += L
    n_lane = CF // L2

    rt2 = row_tile if row_tile is not None else _pick_row_tile(R, _p2_row_cost(L2), tile_target)
    rt2_pad = _ru(rt2, _SUBLANE)
    vmem2 = rt2_pad * _p2_row_cost(L2) + 2 * _SUBLANE * _ru(L2, _LANE) * 4 + 4 * 2 ** 20
    vmem2 = int(min(max(vmem2, 16 * 2 ** 20), gen_limit))

    out2d = pl.pallas_call(
        _broadcast_relu_kernel,
        grid_spec=pltpu.PrefetchScalarGridSpec(
            num_scalar_prefetch=0,
            grid=(pl.cdiv(R, rt2), n_lane),
            in_specs=[
                pl.BlockSpec((rt2, L), lambda i, j: (i, 0)),
                pl.BlockSpec((1, L2), lambda i, j: (0, j)),
            ],
            out_specs=pl.BlockSpec((rt2, L2), lambda i, j: (i, j)),
        ),
        out_shape=jax.ShapeDtypeStruct((R, CF), out_dtype),
        compiler_params=pltpu.CompilerParams(
            dimension_semantics=("parallel", "parallel"),  # both TCs split the write pass
            vmem_limit_bytes=vmem2,
        ),
    )(row_src, colflat)

    return out2d.reshape(R, C, F)


def reference(matrix, weight_t, bias):
    """Pure-JAX reference of the PyTorch forward."""
    R, C, F = matrix.shape
    row = jnp.broadcast_to(jnp.mean(matrix, axis=1, keepdims=True), (R, C, F))
    col = jnp.broadcast_to(jnp.mean(matrix, axis=0, keepdims=True), (R, C, F))
    pool = jnp.concatenate([row, col], axis=2)              # [R, C, 2F]
    out = pool @ weight_t + bias                            # [R, C, F]
    return jnp.maximum(out, 0.0)


if __name__ == "__main__":
    key = jax.random.PRNGKey(0)

    def make_inputs(k, R, C, F):
        kx, kw, kb = jax.random.split(k, 3)
        matrix = jax.random.normal(kx, (R, C, F), dtype=jnp.float32)
        # Xavier-uniform Linear weight (matches _reset_parameters), stored
        # pre-transposed as [2F, F]; nn.Linear default bias init.
        fan_in, fan_out = 2 * F, F
        limit = (6.0 / (fan_in + fan_out)) ** 0.5
        weight_t = jax.random.uniform(kw, (2 * F, F), minval=-limit, maxval=limit,
                                      dtype=jnp.float32)
        b_limit = 1.0 / (fan_in ** 0.5)
        bias = jax.random.uniform(kb, (F,), minval=-b_limit, maxval=b_limit,
                                  dtype=jnp.float32)
        return matrix, weight_t, bias

    configs = [
        dict(R=32, C=8, F=32, row_tile=8),     # multi-step grid, even tiles (lane-dense path)
        dict(R=36, C=8, F=32, row_tile=8),     # ragged rows -> masked tail tile
        dict(R=16, C=4, F=128, row_tile=None), # F >= 128 -> 3-D phase-1 path, auto tiles
    ]
    keys = jax.random.split(key, len(configs) + 1)
    for cfg, k in zip(configs, keys):
        matrix, weight_t, bias = make_inputs(k, cfg["R"], cfg["C"], cfg["F"])
        out = rowcol_pooling(matrix, weight_t, bias, row_tile=cfg["row_tile"])
        out = jax.block_until_ready(out)
        ref = reference(matrix, weight_t, bias)
        assert out.shape == (cfg["R"], cfg["C"], cfg["F"])
        assert jnp.allclose(out, ref, atol=1e-4, rtol=1e-4), f"mismatch vs reference: {cfg}"

    # Optional bf16 output path (halves write-side HBM traffic); bf16 tolerance.
    matrix, weight_t, bias = make_inputs(keys[-1], 32, 8, 32)
    out_bf16 = jax.block_until_ready(
        rowcol_pooling(matrix, weight_t, bias, out_dtype=jnp.bfloat16))
    ref = reference(matrix, weight_t, bias)
    assert jnp.allclose(out_bf16.astype(jnp.float32), ref, atol=5e-2, rtol=5e-2)

    print("KERNEL_OK")
</pallas_src>

<mosaic_0001>
module attributes {stable_mosaic.version = 11 : i64} {
  func.func @_pool_project_flat_kernel(%arg0: i32, %arg1: memref<8x256xf32, #tpu.memory_space<vmem>>, %arg2: memref<256x32xf32, #tpu.memory_space<vmem>>, %arg3: memref<8x32xf32, #tpu.memory_space<vmem>>, %arg4: memref<1x1x256xf32, #tpu.memory_space<vmem>>) attributes {dimension_semantics = [#tpu.dimension_semantics<parallel>], iteration_bounds = array<i64: 4>, scalar_prefetch = 0 : i64, scratch_operands = 0 : i64, tpu.core_type = #tpu.core_type<tc>, window_params = [{transform_indices = @transform_0, window_bounds = array<i64: 8, 256>}, {pipeline_mode = #tpu.pipeline_mode<synchronous>, transform_indices = @transform_1, window_bounds = array<i64: 256, 32>}, {transform_indices = @transform_2, window_bounds = array<i64: 8, 32>}, {transform_indices = @transform_3, window_bounds = array<i64: 1, 1, 256>}]} {
    %c0 = arith.constant 0 : index
    %c0_0 = arith.constant 0 : index
    %0 = vector.load %arg1[%c0, %c0_0] : memref<8x256xf32, #tpu.memory_space<vmem>>, vector<8x256xf32>
    %c0_1 = arith.constant 0 : index
    %c0_2 = arith.constant 0 : index
    %1 = vector.load %arg2[%c0_1, %c0_2] : memref<256x32xf32, #tpu.memory_space<vmem>>, vector<256x32xf32>
    %cst = arith.constant dense<0.000000e+00> : vector<8x32xf32>
    %2 = tpu.matmul %0, %1, %cst {dimension_numbers = #tpu.dot_dimension_numbers<[1], [0], [0], [1], [0, 0, 1, 1], [], []>} : vector<8x256xf32>, vector<256x32xf32>, vector<8x32xf32> -> vector<8x32xf32>
    %c0_3 = arith.constant 0 : index
    %c0_4 = arith.constant 0 : index
    %3 = vector.load %arg3[%c0_3, %c0_4] : memref<8x32xf32, #tpu.memory_space<vmem>>, vector<8x32xf32>
    tpu.vector_store %arg3[%c0_3, %c0_4], %2 {strides = array<i32>} : memref<8x32xf32, #tpu.memory_space<vmem>>, vector<8x32xf32>,
    %cst_5 = arith.constant dense<0.000000e+00> : vector<256xf32>
    %4 = vector.multi_reduction <add>, %0, %cst_5 [0] : vector<8x256xf32> to vector<256xf32>
    %5 = vector.shape_cast %4 : vector<256xf32> to vector<1x256xf32>
    %c0_6 = arith.constant 0 : index
    %c0_7 = arith.constant 0 : index
    %c0_8 = arith.constant 0 : index
    %6 = vector.load %arg4[%c0_6, %c0_7, %c0_8] : memref<1x1x256xf32, #tpu.memory_space<vmem>>, vector<1x1x256xf32>
    %7 = vector.shape_cast %6 : vector<1x1x256xf32> to vector<1x256xf32>
    %8 = vector.shape_cast %5 : vector<1x256xf32> to vector<1x1x256xf32>
    tpu.vector_store %arg4[%c0_6, %c0_7, %c0_8], %8 {strides = array<i32>} : memref<1x1x256xf32, #tpu.memory_space<vmem>>, vector<1x1x256xf32>,
    return
  }
  func.func @transform_0(%arg0: i32) -> (i32, i32) {
    %c0_i32 = arith.constant 0 : i32
    %c0_i32_0 = arith.constant 0 : i32
    return %arg0, %c0_i32 : i32, i32
  }
  func.func @transform_1(%arg0: i32) -> (i32, i32) {
    %c0_i32 = arith.constant 0 : i32
    %c0_i32_0 = arith.constant 0 : i32
    %c0_i32_1 = arith.constant 0 : i32
    return %c0_i32, %c0_i32_0 : i32, i32
  }
  func.func @transform_2(%arg0: i32) -> (i32, i32) {
    %c0_i32 = arith.constant 0 : i32
    %c0_i32_0 = arith.constant 0 : i32
    return %arg0, %c0_i32 : i32, i32
  }
  func.func @transform_3(%arg0: i32) -> (i32, i32, i32) {
    %c0_i32 = arith.constant 0 : i32
    %c0_i32_0 = arith.constant 0 : i32
    %c0_i32_1 = arith.constant 0 : i32
    return %arg0, %c0_i32, %c0_i32_0 : i32, i32, i32
  }
}

</mosaic_0001>

<bundles_post_ra>
// kernel: tpu_custom_call.1
= control target key start
LH: loop header
LB: loop body
LE: loop exit
PB: predicated region body
PF: predicated region fallthrough
CT: control target
= control target key end

     0   :  { %9 = vsyncpa [#allocation3], 0  ;;  %s782_s0 = inlined_call_operand.vmem [shape: f32[32,256], index: 0, kind: input, shape index: {}]   ;;  %s783_s1 = inlined_call_operand.vmem [shape: f32[256,32], index: 1, kind: input, shape index: {}]   ;;  %s784_s2 = inlined_call_operand.hbm [shape: f32[32,32], index: 2, kind: output, shape index: {0}]   ;;  %s785_s3 = inlined_call_operand.hbm [shape: f32[4,1,256], index: 3, kind: output, shape index: {1}]  }
   0x1   :  { %11 = vsyncpa [#allocation3 + $0x1], 0 }
   0x2   :  { %12 = vsyncpa [#allocation5], 0 }
   0x3   :  { %14 = vsyncpa [#allocation5 + $0x1], 0  ;;  %s581_s12 = smov 0   ;;  %s583_s13 = smov 0  }
   0x4   :  { %s585_s14 = smov 0   ;;  %s587_s15 = smov 0  }
   0x5 LB: > { %s602_s16 = sadd.s32 4294967295, %s559_s15   ;;  %s406_s17 = sadd.s32 4294967294, %s559_s15   ;;  %s559_s15 = sphi %s587_s15, %s791_s15   ;;  %s555_s14 = sphi %s585_s14, %s790_s14   ;;  %s551_s13 = sphi %s583_s13, %s789_s13   ;;  %s547_s12 = sphi %s581_s12, %s788_s12  }
   0x6   : > { %s606_s18 = sadd.s32 1, %s559_s15   ;;  %s74_s19 = sadd.s32 1, %s555_s14 }
   0x7   : > { %s71_s20 = ssub.s32 %s559_s15, %s606_s18  ;;  %p84_p0 = scmp.ne.s32.totalorder %s555_s14, %s551_s13 }
   0x8   : > { %p72_p1 = scmp.eq.s32.totalorder %s71_s20, 0  ;;  %p85_p2 = scmp.eq.s32.totalorder %s602_s16, 3 }
   0x9   : > { %p90_p3 = scmp.ne.s32.totalorder %s551_s13, %s547_s12  ;;  %p91_p4 = scmp.eq.s32.totalorder %s406_s17, 3 }
   0xa   : > { %s617_s21 = scalar_select %p72_p1, %s555_s14, %s74_s19  }
   0xb   : > { %p619_p5 = por %p85_p2, %p84_p0  ;;  %p623_p6 = por %p91_p4, %p90_p3 }
   0xc   : > { %p409_p7 = scmp.ge.s32.totalorder %s559_s15, 1  ;;  %p146_p8 = scmp.lt.s32.totalorder %s559_s15, 5 }
   0xe   : > { %p147_p9 = pnand %p409_p7, %p146_p8 }
   0xf   : > { %p175_p10 = scmp.lt.s32.totalorder (!%p147_p9), %s602_s16, 3  ;;  %s731_s17 = sand.u32 (!%p147_p9), 1, %s551_s13  }
  0x10   : > { %150 = sbr.rel (%p147_p9) target bundleno = 185 (0xb9), region = 28  ;;  %s411_s19 = sshll.u32 (!%p147_p9), %s731_s17, 1 }
  0x11   : > { %s174_s27 = scalar_lea.vmem (!%p147_p9), [#allocation4], %s411_s19  ;;  %s285_s30 = scalar_lea.sflag (!%p147_p9), [#allocation5], %s731_s17 }
  0x12   : > { %s311_s28 = sshll.u32 (!%p147_p9), %s174_s27, 4  ;;  %s485_s8 = scalar_lea.hbm (!%p147_p9), %s785_s3, 8  ;;  %s312_s28 = int_to_ptr.vmem [resolvable:$true] %s311_s28 }
  0x15   : > { %v197_v0 = vld [vmem:[%s783_s1 + $0x78] sm:$0xff]  ;;  %v196_v2 = vld [vmem:[%s783_s1 + $0x70] sm:$0xff]  ;;  %v195_v4 = vld [vmem:[%s783_s1 + $0x68] sm:$0xff]  ;;  %s176_s5 = scalar_select %p175_p10, %s602_s16, 3  ;;  %v274_v47 = vlaneseq  ;;  %vm271_vm0 = vcmask 1040384  }
  0x16   : > { %v213_v1 = vld [vmem:[%s783_s1 + $0xf8] sm:$0xff]  ;;  %214 = vmatpush.msra.mxu0 %v197_v0  ;;  %v212_v3 = vld [vmem:[%s783_s1 + $0xf0] sm:$0xff]  ;;  %v211_v5 = vld [vmem:[%s783_s1 + $0xe8] sm:$0xff] }
  0x17   : > { %234 = vmatpush.msra.mxu1 %v213_v1  ;;  %v194_v6 = vld [vmem:[%s783_s1 + $0x60] sm:$0xff]  ;;  %v193_v8 = vld [vmem:[%s783_s1 + $0x58] sm:$0xff]  ;;  %v192_v10 = vld [vmem:[%s783_s1 + $0x50] sm:$0xff]  ;;  %s420_s20 = sshll.u32 %s176_s5, 4  ;;  %vm276_vm1 = vcmp.lt.s32.totalorder %v274_v47, 256 }
  0x18   : > { %215 = vmatpush.msra.mxu0 %v196_v2  ;;  %v210_v7 = vld [vmem:[%s783_s1 + $0xe0] sm:$0xff]  ;;  %v209_v9 = vld [vmem:[%s783_s1 + $0xd8] sm:$0xff]  ;;  %v208_v11 = vld [vmem:[%s783_s1 + $0xd0] sm:$0xff]  ;;  %s179_s7 = scalar_lea.vmem %s782_s0, %s420_s20  ;;  %s417_s20 = sshll.u32 %s602_s16, 1 }
  0x19   : > { %235 = vmatpush.msra.mxu1 %v212_v3  ;;  %v191_v12 = vld [vmem:[%s783_s1 + $0x48] sm:$0xff]  ;;  %v190_v14 = vld [vmem:[%s783_s1 + $0x40] sm:$0xff]  ;;  %v189_v16 = vld [vmem:[%s783_s1 + $0x38] sm:$0xff]  ;;  %s309_s26 = scalar_lea.hbm %s785_s3, %s417_s20 }
  0x1a   : > { %216 = vmatpush.msra.mxu0 %v195_v4  ;;  %v207_v13 = vld [vmem:[%s783_s1 + $0xc8] sm:$0xff]  ;;  %v206_v15 = vld [vmem:[%s783_s1 + $0xc0] sm:$0xff]  ;;  %v205_v17 = vld [vmem:[%s783_s1 + $0xb8] sm:$0xff]  ;;  %s313_s29 = sshll.u32 %s309_s26, 4  ;;  %s314_s29 = int_to_ptr.hbm [resolvable:$true] %s313_s29 }
  0x1b   : > { %236 = vmatpush.msra.mxu1 %v211_v5  ;;  %v188_v18 = vld [vmem:[%s783_s1 + $0x30] sm:$0xff]  ;;  %v187_v20 = vld [vmem:[%s783_s1 + $0x28] sm:$0xff]  ;;  %v186_v22 = vld [vmem:[%s783_s1 + $0x20] sm:$0xff]  ;;  %s479_s4 = sshra.s32 %s314_s29, 4  ;;  %s480_s4 = int_to_ptr.hbm [resolvable:$true] %s479_s4 }
  0x1c   : > { %217 = vmatpush.msra.mxu0 %v194_v6  ;;  %v204_v19 = vld [vmem:[%s783_s1 + $0xb0] sm:$0xff]  ;;  %v203_v21 = vld [vmem:[%s783_s1 + $0xa8] sm:$0xff]  ;;  %v202_v23 = vld [vmem:[%s783_s1 + $0xa0] sm:$0xff]  ;;  %s481_s6 = scalar_lea.hbm %s480_s4, 2  ;;  %p486_p0 = scmp.lt.s32.totalorder %s480_s4, %s785_s3 }
  0x1d   : > { %237 = vmatpush.msra.mxu1 %v210_v7  ;;  %v185_v24 = vld [vmem:[%s783_s1 + $0x18] sm:$0xff]  ;;  %v184_v26 = vld [vmem:[%s783_s1 + $0x10] sm:$0xff]  ;;  %v183_v28 = vld [vmem:[%s783_s1 + $0x8] sm:$0xff]  ;;  %p482_p11 = scmp.ne.s32.totalorder %s480_s4, %s481_s6  ;;  %p487_p1 = scmp.lt.s32.totalorder %s485_s8, %s481_s6 }
  0x1e   : > { %218 = vmatpush.msra.mxu0 %v193_v8  ;;  %v201_v25 = vld [vmem:[%s783_s1 + $0x98] sm:$0xff]  ;;  %v200_v27 = vld [vmem:[%s783_s1 + $0x90] sm:$0xff]  ;;  %v199_v29 = vld [vmem:[%s783_s1 + $0x88] sm:$0xff] }
  0x1f   : > { %238 = vmatpush.msra.mxu1 %v209_v9  ;;  %v182_v30 = vld [vmem:[%s783_s1] sm:$0xff]  ;;  %v181_v33 = vld [vmem:[%s179_s7 + $0x8] sm:$0xff]  ;;  %p483_p12 = pnand %p482_p11, %p619_p5  ;;  %p488_p2 = por %p487_p1, %p486_p0 }
  0x20   : > { %219 = vmatpush.msra.mxu0 %v192_v10  ;;  %v198_v31 = vld [vmem:[%s783_s1 + $0x80] sm:$0xff]  ;;  %v262_v34 = vrot.slane %v181_v33, 4 }
  0x21   : > { %239 = vmatpush.msra.mxu1 %v208_v11  ;;  %v180_v32 = vld [vmem:[%s179_s7] sm:$0xff]  ;;  %p484_p13 = pneg %p483_p12 }
  0x22   : > { %220 = vmatpush.msra.mxu0 %v191_v12  ;;  %v256_v35 = vrot.slane %v180_v32, 4  ;;  %v263_v36 = vadd.f32 %v262_v34, %v181_v33 }
  0x23   : > { %240 = vmatpush.msra.mxu1 %v207_v13  ;;  %p489_p3 = pnand %p488_p2, %p484_p13 }
  0x24   : > { %221 = vmatpush.msra.mxu0 %v190_v14  ;;  %v257_v37 = vadd.f32 %v256_v35, %v180_v32  ;;  %v264_v38 = vrot.slane %v263_v36, 2 }
  0x25   : > { %241 = vmatpush.msra.mxu1 %v206_v15 }
  0x26   : > { %222 = vmatpush.msra.mxu0 %v189_v16  ;;  %v258_v39 = vrot.slane %v257_v37, 2  ;;  %v265_v40 = vadd.f32 %v264_v38, %v263_v36 }
  0x27   : > { %242 = vmatpush.msra.mxu1 %v205_v17 }
  0x28   : > { %223 = vmatpush.msra.mxu0 %v188_v18  ;;  %v259_v41 = vadd.f32 %v258_v39, %v257_v37  ;;  %v266_v42 = vrot.slane %v265_v40, 1 }
  0x29   : > { %243 = vmatpush.msra.mxu1 %v204_v19 }
  0x2a   : > { %224 = vmatpush.msra.mxu0 %v187_v20  ;;  %v260_v43 = vrot.slane %v259_v41, 1  ;;  %v267_v44 = vadd.f32 %v266_v42, %v265_v40 }
  0x2b   : > { %244 = vmatpush.msra.mxu1 %v203_v21 }
  0x2c   : > { %225 = vmatpush.msra.mxu0 %v186_v22  ;;  %v261_v45 = vadd.f32 %v260_v43, %v259_v41  ;;  %v270_v46 = vrot.slane %v267_v44, 7 }
  0x2d   : > { %245 = vmatpush.msra.mxu1 %v202_v23 }
  0x2e   : > { %226 = vmatpush.msra.mxu0 %v185_v24  ;;  %v272_v48 = vsel %vm271_vm0, %v261_v45, %v270_v46 }
  0x2f   : > { %246 = vmatpush.msra.mxu1 %v201_v25  ;;  %278 = vst.msk [vmem:[%s174_s27] sm:$0x3] %vm276_vm1, %v272_v48 }
  0x30   : > { %227 = vmatpush.msra.mxu0 %v184_v26 }
  0x31   : > { %247 = vmatpush.msra.mxu1 %v200_v27 }
  0x32   : > { %228 = vmatpush.msra.mxu0 %v183_v28 }
  0x33   : > { %248 = vmatpush.msra.mxu1 %v199_v29 }
  0x34   : > { %229 = vmatpush.msra.mxu0 %v182_v30 }
  0x35   : > { %249 = vmatpush.msra.mxu1 %v198_v31  ;;  %230 = vmatmul.f32.vlgmr.msra.gmra.mxu0 %v180_v32 }
  0x36   : > { %250 = vmatmul.f32.vlgmr.msra.gmra.mxu1 %v181_v33 }
  0x37   : > { %492 = shalt.err (!%p489_p3)
}
  0x38   : > { %422 = dma.vmem_to_hbm [thread:$0]  (%p619_p5), %s312_s28, 32, %s314_s29, %s285_s30   ;;  %vm254_vm2 = vcmask 261120  }
  0x39   : > { %s410_s11 = sshll.u32 %s731_s17, 3  ;;  %s416_s19 = sshll.u32 %s602_s16, 3 }
  0x3a   : > { %s295_s25 = scalar_lea.hbm %s784_s2, %s416_s19  ;;  %s167_s26 = scalar_lea.vmem [#allocation2], %s410_s11 }
  0x3b   : > { %s297_s27 = sshll.u32 %s167_s26, 4  ;;  %s299_s4 = sshll.u32 %s295_s25, 4  ;;  %s298_s27 = int_to_ptr.vmem [resolvable:$true] %s297_s27  ;;  %s300_s4 = int_to_ptr.hbm [resolvable:$true] %s299_s4 }
  0x3c   : > { %s280_s6 = scalar_lea.sflag [#allocation3], %s731_s17  ;;  %s507_s5 = sshra.s32 %s300_s4, 4  ;;  %s508_s5 = int_to_ptr.hbm [resolvable:$true] %s507_s5 }
  0x3d   : > { %s509_s28 = scalar_lea.hbm %s508_s5, 8  ;;  %s513_s30 = scalar_lea.hbm %s784_s2, 32 }
  0x3e   : > { %p510_p4 = scmp.ne.s32.totalorder %s508_s5, %s509_s28  ;;  %p514_p9 = scmp.lt.s32.totalorder %s508_s5, %s784_s2 }
  0x3f   : > { %p515_p10 = scmp.lt.s32.totalorder %s513_s30, %s509_s28 }
  0x40   : > { %p511_p7 = pnand %p510_p4, %p619_p5 }
  0x41   : > { %p516_p11 = por %p515_p10, %p514_p9 }
  0x42   : > { %p512_p8 = pneg %p511_p7 }
  0x44   : > { %p517_p12 = pnand %p516_p11, %p512_p8 }
  0xb2   : > { %v231_v49 = vpop.f32.mrf.mxu0 }
  0xb3   : > { %v251_v50 = vpop.f32.mrf.mxu1 }
  0xb4   : > { %v252_v51 = vadd.f32 %v251_v50, %v231_v49 }
  0xb6   : > { %255 = vst.msk [vmem:[%s167_s26] sm:$0xff] %vm254_vm2, %v252_v51 }
  0xb7   : > { %520 = shalt.err (!%p517_p12)
}
  0xb8   : > { %421 = dma.vmem_to_hbm [thread:$0]  (%p619_p5), %s298_s27, 128, %s300_s4, %s280_s6  }
  0xb9 PF: > { %p432_p13 = scmp.ge.s32.totalorder %s559_s15, 2  ;;  %s325_s17 = sand.u32 1, %s547_s12  }
  0xba   : > { %s326_s9 = scalar_lea.sflag [#allocation3], %s325_s17 }
  0xbb   : > { %p426_p0 = pnand %p432_p13, %p623_p6 }
  0xbd   : > { %p427_p1 = pneg %p426_p0 }
  0xbf   : > { %538 = dma.done.wait (%p427_p1), %s326_s9, 128  }
  0xc0   : > { %540 = vsyncadd (%p427_p1), %s326_s9, 4294967168  ;;  %s336_s10 = scalar_lea.sflag [#allocation5], %s325_s17 }
  0xc1   : > { %542 = dma.done.wait (%p427_p1), %s336_s10, 32  }
  0xc2   : > { %544 = vsyncadd (%p427_p1), %s336_s10, 4294967264  ;;  %p17_p5 = scmp.ge.s32.totalorder %s606_s18, 6   ;;  %s788_s12 = smov %s551_s13 }
  0xc3   : > { %s789_s13 = smov %s555_s14  ;;  %s790_s14 = smov %s617_s21 }
  0xc4   : > { %s791_s15 = smov %s606_s18  ;;  %19 = sbr.rel (!%p17_p5) target bundleno = 5 (0x5), region = 80 }
  0xc9   :  { %342 = vsyncpa [#allocation3], 1 }
  0xca   :  { %344 = vsyncpa [#allocation3 + $0x1], 1 }
  0xcb   :  { %345 = vsyncpa [#allocation5], 1 }
  0xcc   :  { %347 = vsyncpa [#allocation5 + $0x1], 1 }

</bundles_post_ra>
